<compile_context>
chip_gen: v5e
topology: v5e:2x2
jax: 0.10.0
libtpu: 0.0.40
codegen_flags: <defaults>
</compile_context>

<pallas_src>
import functools

import jax
import jax.numpy as jnp
from jax import lax
from jax.experimental import pallas as pl
from jax.experimental.pallas import tpu as pltpu


def _focal_loss_kernel(x_ref, t_ref, out_ref, *, gamma, hw, tile_hw,
                       ignore_index, apply_ignore):
    """Grid = (num_batch_blocks, num_hw_tiles).  One step reduces a lane-dense
    (bn, C, tile_hw) slab to a single f32 partial-loss scalar.

    x_ref:   (bn, C, tile_hw) logits block (any float dtype; widened to f32 here)
    t_ref:   (bn, 1, tile_hw) int32 target block
    out_ref: (1, 1, 1, 1)     this step's partial loss sum
    """
    x = x_ref[...].astype(jnp.float32)               # (bn, C, T)
    t = t_ref[...]                                   # (bn, 1, T)

    # Numerically stable log-softmax over the class (sublane) axis.
    m = jnp.max(x, axis=1, keepdims=True)            # (bn, 1, T)
    z = x - m
    lse = jnp.log(jnp.sum(jnp.exp(z), axis=1, keepdims=True))   # (bn, 1, T)

    # gather(1, target): fold the one-hot into a single select (no f32 one-hot
    # materialization / extra multiply); the class iota rides on the sublane axis
    # and feeds the compare directly.
    cls = lax.broadcasted_iota(jnp.int32, x.shape, 1)            # (bn, C, T)
    zt = jnp.sum(jnp.where(cls == t, z, 0.0), axis=1, keepdims=True)
    logpt = zt - lse                                 # (bn, 1, T)

    if gamma == 0:
        loss = -logpt                                # no exp / pow at all
    else:
        pt = jnp.exp(logpt)
        omp = 1.0 - pt
        g_int = int(gamma) if float(gamma) == int(float(gamma)) else None
        if g_int is not None and 1 <= g_int <= 8:
            w = omp                                  # repeated multiply stays on the VPU
            for _ in range(g_int - 1):
                w = w * omp
        else:
            # Clamp: rounding can push pt slightly above 1 -> (1-pt) < 0 -> NaN in pow.
            w = jnp.maximum(omp, 0.0) ** jnp.float32(gamma)
        loss = -(w * logpt)

    if apply_ignore:
        # torch filters rows where target == ignore_index before the loss; since
        # log_softmax is per-pixel, zeroing their contribution gives the same sum.
        loss = jnp.where(t != ignore_index, loss, 0.0)

    ragged = (hw % tile_hw) != 0
    if not ragged:
        out_ref[...] = jnp.sum(loss).reshape(1, 1, 1, 1)
    else:
        i = pl.program_id(1)
        last = pl.num_programs(1) - 1

        @pl.when(i != last)
        def _():                                     # full tiles skip the tail mask
            out_ref[...] = jnp.sum(loss).reshape(1, 1, 1, 1)

        @pl.when(i == last)
        def _():                                     # mask garbage in the ragged tail
            col = lax.broadcasted_iota(jnp.int32, (1, 1, tile_hw), 2)
            valid = (i * tile_hw + col) < hw
            out_ref[...] = jnp.sum(jnp.where(valid, loss, 0.0)).reshape(1, 1, 1, 1)


def focal_loss_pallas(logits_nchw, target_nhw, *, gamma=0, ignore_index=-100,
                      size_average=False, max_tile_hw=65536, max_batch_block=256):
    """Pallas FocalLoss forward. Matches FocalLoss(gamma, ignore_index, size_average)."""
    n, c, h, w = logits_nchw.shape
    hw = h * w

    # NCHW-native, copy-free reshapes only (no transpose, no pad, no dtype upcast:
    # bf16 logits flow straight into the kernel and are widened in VMEM).
    x = logits_nchw.reshape(n, c, hw)                     # (N, C, HW)
    t = target_nhw.reshape(n, 1, hw).astype(jnp.int32)    # (N, 1, HW)

    itemsize = jnp.dtype(logits_nchw.dtype).itemsize
    sub = 8 * max(1, 4 // itemsize)              # sublanes/vreg: f32 8, bf16 16, i8 32
    c_pad_in = pl.cdiv(c, sub) * sub             # padded class rows of the logits tile
    c_pad_f32 = pl.cdiv(c, 8) * 8                # padded class rows of f32 temporaries

    # Generation-aware VMEM limit: ~half of physical (64 MiB on v5e/v6e which have
    # 128 MiB VMEM, 32 MiB on v7x which has 64 MiB).
    try:
        vmem_phys = int(pltpu.get_tpu_info().vmem_capacity_bytes)
    except Exception:                            # interpret mode / info unavailable
        vmem_phys = 64 * 1024 * 1024
    vmem_limit = max(32 * 1024 * 1024, min(vmem_phys // 2, 64 * 1024 * 1024))

    # Per-(batch-row, spatial-column) VMEM bytes: double-buffered logits + int32
    # target tiles (both sublane-padded) plus ~4 f32 class-slab temporaries and a
    # handful of f32 row vectors built inside the kernel.
    col_bytes_in = c_pad_in * itemsize + 8 * 4
    per_col = 2 * col_bytes_in + 4 * c_pad_f32 * 4 + 6 * 8 * 4
    budget_cols = max(128, (vmem_limit // 2) // per_col)

    if hw <= min(max_tile_hw, budget_cols):
        # Small images: take the whole spatial extent and block several batch rows
        # per step so every step still moves a sizeable slab.
        tile_hw = hw
        bn = max(1, min(n, max_batch_block, budget_cols // max(hw, 1)))
        while n % bn:                            # exact batch blocks -> no batch masking
            bn -= 1
    else:
        bn = 1
        tile_hw = max(128, min((max_tile_hw // 128) * 128,
                               (budget_cols // 128) * 128))
    nb = n // bn
    num_tiles = pl.cdiv(hw, tile_hw)

    kernel = functools.partial(
        _focal_loss_kernel, gamma=gamma, hw=hw, tile_hw=tile_hw,
        ignore_index=int(ignore_index), apply_ignore=bool(ignore_index >= 0))

    cost = pl.CostEstimate(
        flops=7 * n * c * hw,
        transcendentals=n * hw * (c + 1 + (0 if gamma == 0 else 1)),
        bytes_accessed=n * c * hw * itemsize + n * hw * 4 + nb * num_tiles * 4,
    )

    partials = pl.pallas_call(
        kernel,
        out_shape=jax.ShapeDtypeStruct((nb, num_tiles, 1, 1), jnp.float32),
        grid_spec=pltpu.PrefetchScalarGridSpec(
            num_scalar_prefetch=0,
            grid=(nb, num_tiles),
            in_specs=[
                pl.BlockSpec((bn, c, tile_hw), lambda b, i: (b, 0, i)),
                pl.BlockSpec((bn, 1, tile_hw), lambda b, i: (b, 0, i)),
            ],
            out_specs=pl.BlockSpec((1, 1, 1, 1), lambda b, i: (b, i, 0, 0)),
        ),
        compiler_params=pltpu.CompilerParams(
            dimension_semantics=("parallel", "parallel"),
            vmem_limit_bytes=vmem_limit),
        cost_estimate=cost,
    )(x, t)

    total = jnp.sum(partials)
    if size_average:
        if ignore_index >= 0:
            # torch divides by the number of kept rows (extra pass over the int
            # targets; only taken on this non-default config).
            denom = jnp.sum(target_nhw != ignore_index).astype(jnp.float32)
        else:
            # Default config: torch takes loss.mean() over all N*H*W rows.
            # TODO(synk): targets equal to a *negative* ignore_index are assumed
            # absent (torch's gather would error on them anyway).
            denom = jnp.float32(n * hw)
        return total / denom
    return total


def _focal_loss_ref(logits_nchw, target_nhw, *, gamma=0, ignore_index=-100,
                    size_average=False):
    """Pure-JAX reference of the PyTorch forward."""
    n, c, h, w = logits_nchw.shape
    x = jnp.transpose(logits_nchw, (0, 2, 3, 1)).reshape(-1, c).astype(jnp.float32)
    t = target_nhw.reshape(-1).astype(jnp.int32)
    keep = (t != ignore_index) if ignore_index >= 0 else jnp.ones_like(t, dtype=bool)
    logsm = jax.nn.log_softmax(x, axis=1)
    t_safe = jnp.clip(t, 0, c - 1)
    logpt = jnp.take_along_axis(logsm, t_safe[:, None], axis=1)[:, 0]
    pt = jnp.exp(logpt)
    loss = -1.0 * (1.0 - pt) ** gamma * logpt
    loss = jnp.where(keep, loss, 0.0)
    if size_average:
        return jnp.sum(loss) / jnp.sum(keep).astype(jnp.float32)
    return jnp.sum(loss)


if __name__ == "__main__":
    key = jax.random.PRNGKey(0)
    k1, k2, k3, k4, k5, k6, k7 = jax.random.split(key, 7)

    # 1) Module-default config (gamma=0, ignore_index=-100, sum) at NCHW (2,4,16,16).
    N, C, H, W = 2, 4, 16, 16
    logits = jax.random.normal(k1, (N, C, H, W), dtype=jnp.float32)
    target = jax.random.randint(k2, (N, H, W), 0, C, dtype=jnp.int32)
    out = jax.block_until_ready(
        focal_loss_pallas(logits, target, gamma=0, ignore_index=-100,
                          size_average=False))
    ref = _focal_loss_ref(logits, target, gamma=0, ignore_index=-100,
                          size_average=False)
    assert jnp.allclose(out, ref, rtol=1e-5, atol=1e-4), (out, ref)

    # 2) gamma=2, size_average=True, forced 128-col tiles -> ragged tail + multi-tile
    #    per-tile-partial path (hw = 300).
    N2, C2, H2, W2 = 2, 5, 15, 20
    logits2 = jax.random.normal(k3, (N2, C2, H2, W2), dtype=jnp.float32)
    target2 = jax.random.randint(k4, (N2, H2, W2), 0, C2, dtype=jnp.int32)
    out2 = jax.block_until_ready(
        focal_loss_pallas(logits2, target2, gamma=2, ignore_index=-100,
                          size_average=True, max_tile_hw=128))
    ref2 = _focal_loss_ref(logits2, target2, gamma=2, ignore_index=-100,
                           size_average=True)
    assert jnp.allclose(out2, ref2, rtol=1e-5, atol=1e-4), (out2, ref2)

    # 3) ignore_index >= 0 path: pixels labelled 255 are filtered (sum and mean).
    N3, C3, H3, W3 = 2, 4, 16, 16
    logits3 = jax.random.normal(k5, (N3, C3, H3, W3), dtype=jnp.float32)
    base_t3 = jax.random.randint(k6, (N3, H3, W3), 0, C3, dtype=jnp.int32)
    drop = jax.random.uniform(k7, (N3, H3, W3)) < 0.25
    target3 = jnp.where(drop, 255, base_t3)
    out3 = jax.block_until_ready(
        focal_loss_pallas(logits3, target3, gamma=2, ignore_index=255,
                          size_average=True))
    ref3 = _focal_loss_ref(logits3, target3, gamma=2, ignore_index=255,
                           size_average=True)
    assert jnp.allclose(out3, ref3, rtol=1e-5, atol=1e-4), (out3, ref3)

    print("KERNEL_OK")
</pallas_src>

<mosaic_0001>
module attributes {stable_mosaic.version = 11 : i64} {
  func.func @_focal_loss_kernel(%arg0: i32, %arg1: i32, %arg2: memref<2x4x256xf32, #tpu.memory_space<vmem>>, %arg3: memref<2x1x256xi32, #tpu.memory_space<vmem>>, %arg4: memref<1x1x1x1xf32, #tpu.memory_space<vmem>>) attributes {dimension_semantics = [#tpu.dimension_semantics<parallel>, #tpu.dimension_semantics<parallel>], iteration_bounds = array<i64: 1, 1>, scalar_prefetch = 0 : i64, scratch_operands = 0 : i64, tpu.core_type = #tpu.core_type<tc>, window_params = [{transform_indices = @transform_0, window_bounds = array<i64: 2, 4, 256>}, {transform_indices = @transform_1, window_bounds = array<i64: 2, 1, 256>}, {transform_indices = @transform_2, window_bounds = array<i64: 1, 1, 1, 1>}]} {
    %c0 = arith.constant 0 : index
    %c0_0 = arith.constant 0 : index
    %c0_1 = arith.constant 0 : index
    %0 = vector.load %arg2[%c0, %c0_0, %c0_1] : memref<2x4x256xf32, #tpu.memory_space<vmem>>, vector<2x4x256xf32>
    %c0_2 = arith.constant 0 : index
    %c0_3 = arith.constant 0 : index
    %c0_4 = arith.constant 0 : index
    %1 = vector.load %arg3[%c0_2, %c0_3, %c0_4] : memref<2x1x256xi32, #tpu.memory_space<vmem>>, vector<2x1x256xi32>
    %cst = arith.constant dense<0xFF800000> : vector<2x256xf32>
    %2 = vector.multi_reduction <maximumf>, %0, %cst [1] : vector<2x4x256xf32> to vector<2x256xf32>
    %3 = vector.shape_cast %2 : vector<2x256xf32> to vector<2x1x256xf32>
    %4 = vector.broadcast %3 : vector<2x1x256xf32> to vector<2x4x256xf32>
    %5 = arith.subf %0, %4 : vector<2x4x256xf32>
    %6 = math.exp %5 : vector<2x4x256xf32>
    %cst_5 = arith.constant dense<0.000000e+00> : vector<2x256xf32>
    %7 = vector.multi_reduction <add>, %6, %cst_5 [1] : vector<2x4x256xf32> to vector<2x256xf32>
    %8 = vector.shape_cast %7 : vector<2x256xf32> to vector<2x1x256xf32>
    %9 = math.log %8 : vector<2x1x256xf32>
    %10 = tpu.iota {dimensions = array<i32: 1>} : vector<2x4x256xi32>
    %11 = vector.broadcast %1 : vector<2x1x256xi32> to vector<2x4x256xi32>
    %12 = arith.cmpi eq, %10, %11 : vector<2x4x256xi32>
    %cst_6 = arith.constant 0.000000e+00 : f32
    %13 = vector.broadcast %cst_6 : f32 to vector<2x4x256xf32>
    %14 = arith.select %12, %5, %13 : vector<2x4x256xi1>, vector<2x4x256xf32>
    %cst_7 = arith.constant dense<0.000000e+00> : vector<2x256xf32>
    %15 = vector.multi_reduction <add>, %14, %cst_7 [1] : vector<2x4x256xf32> to vector<2x256xf32>
    %16 = vector.shape_cast %15 : vector<2x256xf32> to vector<2x1x256xf32>
    %17 = arith.subf %16, %9 : vector<2x1x256xf32>
    %cst_8 = arith.constant 0.000000e+00 : f32
    %18 = vector.broadcast %cst_8 : f32 to vector<2x1x256xf32>
    %19 = arith.subf %18, %17 : vector<2x1x256xf32>
    %20 = vector.shape_cast %19 : vector<2x1x256xf32> to vector<1x2x1x256xf32>
    %cst_9 = arith.constant dense<0.000000e+00> : vector<1xf32>
    %21 = vector.multi_reduction <add>, %20, %cst_9 [1, 2, 3] : vector<1x2x1x256xf32> to vector<1xf32>
    %22 = vector.shape_cast %21 : vector<1xf32> to vector<1x1x1x1xf32>
    %23 = vector.extract %22[0, 0, 0, 0] : f32 from vector<1x1x1x1xf32>
    %24 = vector.broadcast %23 : f32 to vector<1x1x1x1xf32>
    %c0_10 = arith.constant 0 : index
    %c0_11 = arith.constant 0 : index
    %c0_12 = arith.constant 0 : index
    %c0_13 = arith.constant 0 : index
    %25 = vector.load %arg4[%c0_10, %c0_11, %c0_12, %c0_13] : memref<1x1x1x1xf32, #tpu.memory_space<vmem>>, vector<1x1x1x1xf32>
    tpu.vector_store %arg4[%c0_10, %c0_11, %c0_12, %c0_13], %24 {strides = array<i32>} : memref<1x1x1x1xf32, #tpu.memory_space<vmem>>, vector<1x1x1x1xf32>,
    return
  }
  func.func @transform_0(%arg0: i32, %arg1: i32) -> (i32, i32, i32) {
    %c0_i32 = arith.constant 0 : i32
    %c0_i32_0 = arith.constant 0 : i32
    return %arg0, %c0_i32, %arg1 : i32, i32, i32
  }
  func.func @transform_1(%arg0: i32, %arg1: i32) -> (i32, i32, i32) {
    %c0_i32 = arith.constant 0 : i32
    %c0_i32_0 = arith.constant 0 : i32
    return %arg0, %c0_i32, %arg1 : i32, i32, i32
  }
  func.func @transform_2(%arg0: i32, %arg1: i32) -> (i32, i32, i32, i32) {
    %c0_i32 = arith.constant 0 : i32
    %c0_i32_0 = arith.constant 0 : i32
    %c0_i32_1 = arith.constant 0 : i32
    return %arg0, %arg1, %c0_i32, %c0_i32_0 : i32, i32, i32, i32
  }
}

</mosaic_0001>

<bundles_post_ra>
// kernel: tpu_custom_call.1
= control target key start
LH: loop header
LB: loop body
LE: loop exit
PB: predicated region body
PF: predicated region fallthrough
CT: control target
= control target key end

     0   :  { %7 = vsyncpa [#allocation3], 0  ;;  %s424_s0 = inlined_call_operand.hbm [shape: f32[2,4,256], index: 0, kind: input, shape index: {}]   ;;  %s425_s1 = inlined_call_operand.hbm [shape: s32[2,1,256], index: 1, kind: input, shape index: {}]   ;;  %s426_s2 = inlined_call_operand.hbm [shape: f32[1,1,1,1], index: 2, kind: output, shape index: {}]  }
   0x1   :  { %8 = vsyncpa [#allocation6], 0 }
   0x2   :  { %9 = vsyncpa [#allocation4], 0  ;;  %s14_s11 = sshll.u32 %s424_s0, 4  ;;  %s355_s12 = smov [#allocation2]   ;;  %s15_s11 = int_to_ptr.hbm [resolvable:$true] %s14_s11 }
   0x3   :  { %s16_s13 = sshll.u32 %s355_s12, 4  ;;  %s27_s16 = sshll.u32 %s425_s1, 4  ;;  %s17_s13 = int_to_ptr.vmem [resolvable:$true] %s16_s13  ;;  %s28_s16 = int_to_ptr.hbm [resolvable:$true] %s27_s16 }
   0x4   :  { %s356_s17 = smov 128   ;;  %s357_s18 = smov 8  }
   0x5   :  { %22 = dma.hbm_to_vmem [thread:$0]  %s15_s11, 256, %s17_s13, [#allocation3], %s356_s17, %s356_s17, %s357_s18  }
   0x6   :  { %s358_s19 = smov [#allocation5]   ;;  %s359_s21 = smov 32  }
   0x7   :  { %s29_s20 = sshll.u32 %s358_s19, 4  ;;  %s360_s22 = smov 2   ;;  %s30_s20 = int_to_ptr.vmem [resolvable:$true] %s29_s20 }
   0x8   :  { %35 = dma.hbm_to_vmem [thread:$0]  %s28_s16, 64, %s30_s20, [#allocation6], %s359_s21, %s359_s21, %s360_s22  }
   0x9   :  { %349 = dma.done.wait [#allocation3], 256  }
   0xa   :  { %350 = vsyncadd [#allocation3], 4294967040 }
   0xb   :  { %351 = dma.done.wait [#allocation6], 64  }
   0xc   :  { %352 = vsyncadd [#allocation6], 4294967232  ;;  %v44_v0 = vld [vmem:[#allocation2] sm:$0xff]  ;;  %v45_v1 = vld [vmem:[#allocation2 + $0x8] sm:$0xff]  ;;  %vm61_vm0 = vcmask 1043456   ;;  %v155_v44 = vlaneseq  ;;  %vm218_vm5 = vcmask 1040384  }
   0xd   :  { %50 = vst [vmem:[#allocation1] ss:$2 sm:$0xff] %v44_v0  ;;  %v46_v45 = vld [vmem:[#allocation5] sm:$0x3]  ;;  %v47_v46 = vld [vmem:[#allocation5 + $0x2] sm:$0x3] }
   0xe   :  { %54 = vst [vmem:[#allocation1 + $0x10] ss:$2 sm:$0xff] %v45_v1  ;;  %v156_v47 = vshrl.u32 %v155_v44, 7  ;;  %v157_v60 = vperm.slane %v46_v45, 0  ;;  %v158_v61 = vperm.slane %v46_v45, 1  ;;  %v159_v62 = vperm.slane %v47_v46, 0 }
   0xf   :  { %v160_v63 = vperm.slane %v47_v46, 1  ;;  %s361_s0 = smov [#allocation7]   ;;  %s245_s25 = sshll.u32 %s426_s2, 4  ;;  %vm236_vm6 = vcmask 0   ;;  %s246_s25 = int_to_ptr.hbm [resolvable:$true] %s245_s25 }
  0x10   :  { %vm393_vm1 = vcmp.eq.s32.totalorder %v156_v47, %v157_v60  ;;  %vm397_vm2 = vcmp.eq.s32.totalorder %v156_v47, %v158_v61  ;;  %vm401_vm3 = vcmp.eq.s32.totalorder %v156_v47, %v159_v62  ;;  %s243_s1 = sshll.u32 %s361_s0, 4  ;;  %s244_s1 = int_to_ptr.vmem [resolvable:$true] %s243_s1 }
  0x11   :  { %vm405_vm4 = vcmp.eq.s32.totalorder %v156_v47, %v160_v63 }
  0x14   :  { %v51_v2 = vld.sshfl [vmem:[#allocation1] sm:$0xff pattern:$0x75316420]  ;;  %v52_v3 = vld.sshfl [vmem:[#allocation1 + $0x8] sm:$0xff pattern:$0x75316420] }
  0x15   :  { %v55_v4 = vld.sshfl [vmem:[#allocation1 + $0x10] sm:$0xff pattern:$0x75316420]  ;;  %v56_v5 = vld.sshfl [vmem:[#allocation1 + $0x18] sm:$0xff pattern:$0x75316420] }
  0x16   :  { %v62_v6 = vsel %vm61_vm0, %v51_v2, -inf  ;;  %v69_v7 = vsel %vm61_vm0, %v52_v3, -inf  ;;  %v76_v8 = vsel %vm61_vm0, %v55_v4, -inf  ;;  %v83_v9 = vsel %vm61_vm0, %v56_v5, -inf }
  0x17   :  { %v63_v10 = vrot.slane %v62_v6, 4  ;;  %v70_v11 = vrot.slane %v69_v7, 4  ;;  %v77_v12 = vrot.slane %v76_v8, 4  ;;  %v84_v13 = vrot.slane %v83_v9, 4 }
  0x19   :  { %v64_v14 = vmax.f32 %v62_v6, %v63_v10  ;;  %v71_v15 = vmax.f32 %v69_v7, %v70_v11  ;;  %v78_v16 = vmax.f32 %v76_v8, %v77_v12  ;;  %v85_v17 = vmax.f32 %v83_v9, %v84_v13 }
  0x1b   :  { %v65_v18 = vrot.slane %v64_v14, 2  ;;  %v72_v19 = vrot.slane %v71_v15, 2  ;;  %v79_v20 = vrot.slane %v78_v16, 2  ;;  %v86_v21 = vrot.slane %v85_v17, 2 }
  0x1d   :  { %v66_v22 = vmax.f32 %v64_v14, %v65_v18  ;;  %v73_v23 = vmax.f32 %v71_v15, %v72_v19  ;;  %v80_v24 = vmax.f32 %v78_v16, %v79_v20  ;;  %v87_v25 = vmax.f32 %v85_v17, %v86_v21 }
  0x1f   :  { %v67_v26 = vrot.slane %v66_v22, 1  ;;  %v74_v27 = vrot.slane %v73_v23, 1  ;;  %v81_v28 = vrot.slane %v80_v24, 1  ;;  %v88_v29 = vrot.slane %v87_v25, 1 }
  0x21   :  { %v68_v30 = vmax.f32 %v66_v22, %v67_v26  ;;  %v75_v31 = vmax.f32 %v73_v23, %v74_v27  ;;  %v82_v32 = vmax.f32 %v80_v24, %v81_v28  ;;  %v89_v33 = vmax.f32 %v87_v25, %v88_v29 }
  0x23   :  { %v94_v34 = vrot.slane %v75_v31, 4  ;;  %v95_v35 = vrot.slane %v89_v33, 4 }
  0x25   :  { %v96_v36 = vsel %vm61_vm0, %v68_v30, %v94_v34  ;;  %v97_v37 = vsel %vm61_vm0, %v82_v32, %v95_v35 }
  0x26   :  { %v100_v38 = vsub.f32 %v44_v0, %v96_v36  ;;  %v101_v39 = vsub.f32 %v45_v1, %v97_v37 }
  0x28   :  { %v102_v40 = vmul.f32 1.442695, %v100_v38  ;;  %v104_v41 = vmul.f32 1.442695, %v101_v39 }
  0x2a   :  { %265 = vpow2.f32 %v102_v40 }
  0x2b   :  { %267 = vpow2.f32 %v104_v41 }
  0x30   :  { %v266_v42 = vpop.eup %265 }
  0x31   :  { %v268_v43 = vpop.eup %267  ;;  %108 = vst [vmem:[#allocation1] ss:$2 sm:$0xff] %v266_v42 }
  0x32   :  { %112 = vst [vmem:[#allocation1 + $0x10] ss:$2 sm:$0xff] %v268_v43 }
  0x38   :  { %v109_v48 = vld.sshfl [vmem:[#allocation1] sm:$0xff pattern:$0x75316420]  ;;  %v110_v49 = vld.sshfl [vmem:[#allocation1 + $0x8] sm:$0xff pattern:$0x75316420] }
  0x39   :  { %v113_v50 = vld.sshfl [vmem:[#allocation1 + $0x10] sm:$0xff pattern:$0x75316420]  ;;  %v114_v51 = vld.sshfl [vmem:[#allocation1 + $0x18] sm:$0xff pattern:$0x75316420] }
  0x3a   :  { %v119_v52 = vsel %vm61_vm0, %v109_v48, 0.0  ;;  %v126_v53 = vsel %vm61_vm0, %v110_v49, 0.0  ;;  %v133_v54 = vsel %vm61_vm0, %v113_v50, 0.0  ;;  %v140_v55 = vsel %vm61_vm0, %v114_v51, 0.0  ;;  %167 = vst [vmem:[#allocation1] ss:$2 sm:$0xff] %v100_v38 }
  0x3b   :  { %v120_v56 = vrot.slane %v119_v52, 4  ;;  %v127_v57 = vrot.slane %v126_v53, 4  ;;  %v134_v58 = vrot.slane %v133_v54, 4  ;;  %v141_v59 = vrot.slane %v140_v55, 4  ;;  %171 = vst [vmem:[#allocation1 + $0x10] ss:$2 sm:$0xff] %v101_v39 }
  0x3d   :  { %v121_v0 = vadd.f32 %v120_v56, %v119_v52  ;;  %v128_v1 = vadd.f32 %v127_v57, %v126_v53  ;;  %v135_v2 = vadd.f32 %v134_v58, %v133_v54  ;;  %v142_v3 = vadd.f32 %v141_v59, %v140_v55 }
  0x3f   :  { %v122_v4 = vrot.slane %v121_v0, 2  ;;  %v129_v5 = vrot.slane %v128_v1, 2  ;;  %v136_v6 = vrot.slane %v135_v2, 2  ;;  %v143_v7 = vrot.slane %v142_v3, 2 }
  0x41   :  { %v123_v12 = vadd.f32 %v122_v4, %v121_v0  ;;  %v130_v13 = vadd.f32 %v129_v5, %v128_v1  ;;  %v137_v14 = vadd.f32 %v136_v6, %v135_v2  ;;  %v144_v15 = vadd.f32 %v143_v7, %v142_v3  ;;  %v168_v16 = vld.sshfl [vmem:[#allocation1] sm:$0xff pattern:$0x75316420]  ;;  %v169_v17 = vld.sshfl [vmem:[#allocation1 + $0x8] sm:$0xff pattern:$0x75316420] }
  0x42   :  { %v172_v18 = vld.sshfl [vmem:[#allocation1 + $0x10] sm:$0xff pattern:$0x75316420]  ;;  %v173_v19 = vld.sshfl [vmem:[#allocation1 + $0x18] sm:$0xff pattern:$0x75316420] }
  0x43   :  { %v124_v20 = vrot.slane %v123_v12, 1  ;;  %v131_v21 = vrot.slane %v130_v13, 1  ;;  %v138_v22 = vrot.slane %v137_v14, 1  ;;  %v145_v23 = vrot.slane %v144_v15, 1 }
  0x44   :  { %v178_v24 = vsel %vm393_vm1, %v168_v16, 0.0  ;;  %v179_v25 = vsel %vm397_vm2, %v169_v17, 0.0  ;;  %v180_v26 = vsel %vm401_vm3, %v172_v18, 0.0  ;;  %v181_v27 = vsel %vm405_vm4, %v173_v19, 0.0 }
  0x45   :  { %v125_v28 = vadd.f32 %v124_v20, %v123_v12  ;;  %v132_v29 = vadd.f32 %v131_v21, %v130_v13  ;;  %v139_v30 = vadd.f32 %v138_v22, %v137_v14  ;;  %v146_v31 = vadd.f32 %v145_v23, %v144_v15 }
  0x46   :  { %v182_v32 = vsel %vm61_vm0, %v178_v24, 0.0  ;;  %v189_v33 = vsel %vm61_vm0, %v179_v25, 0.0  ;;  %v196_v34 = vsel %vm61_vm0, %v180_v26, 0.0  ;;  %v203_v35 = vsel %vm61_vm0, %v181_v27, 0.0 }
  0x47   :  { %269 = vlog2.f32 %v125_v28  ;;  %v183_v36 = vrot.slane %v182_v32, 4  ;;  %v190_v37 = vrot.slane %v189_v33, 4  ;;  %v197_v38 = vrot.slane %v196_v34, 4 }
  0x48   :  { %271 = vlog2.f32 %v132_v29  ;;  %v204_v39 = vrot.slane %v203_v35, 4 }
  0x49   :  { %273 = vlog2.f32 %v139_v30  ;;  %v184_v40 = vadd.f32 %v183_v36, %v182_v32  ;;  %v191_v41 = vadd.f32 %v190_v37, %v189_v33  ;;  %v198_v42 = vadd.f32 %v197_v38, %v196_v34 }
  0x4a   :  { %275 = vlog2.f32 %v146_v31  ;;  %v205_v43 = vadd.f32 %v204_v39, %v203_v35 }
  0x4b   :  { %v185_v44 = vrot.slane %v184_v40, 2  ;;  %v192_v45 = vrot.slane %v191_v41, 2  ;;  %v199_v46 = vrot.slane %v198_v42, 2 }
  0x4c   :  { %v206_v47 = vrot.slane %v205_v43, 2 }
  0x4d   :  { %v270_v48 = vpop.eup %269  ;;  %v186_v49 = vadd.f32 %v185_v44, %v184_v40  ;;  %v193_v50 = vadd.f32 %v192_v45, %v191_v41  ;;  %v200_v51 = vadd.f32 %v199_v46, %v198_v42 }
  0x4e   :  { %v272_v52 = vpop.eup %271  ;;  %v148_v53 = vmul.f32 0.6931472, %v270_v48  ;;  %v207_v54 = vadd.f32 %v206_v47, %v205_v43 }
  0x4f   :  { %v274_v55 = vpop.eup %273  ;;  %v150_v56 = vmul.f32 0.6931472, %v272_v52  ;;  %v187_v57 = vrot.slane %v186_v49, 1  ;;  %v194_v58 = vrot.slane %v193_v50, 1  ;;  %v201_v59 = vrot.slane %v200_v51, 1 }
  0x50   :  { %v276_v60 = vpop.eup %275  ;;  %v152_v61 = vmul.f32 0.6931472, %v274_v55  ;;  %v208_v62 = vrot.slane %v207_v54, 1 }
  0x51   :  { %v154_v63 = vmul.f32 0.6931472, %v276_v60  ;;  %v188_v0 = vadd.f32 %v187_v57, %v186_v49  ;;  %v195_v1 = vadd.f32 %v194_v58, %v193_v50  ;;  %v202_v2 = vadd.f32 %v201_v59, %v200_v51 }
  0x52   :  { %v209_v3 = vadd.f32 %v208_v62, %v207_v54 }
  0x53   :  { %v210_v4 = vsub.f32 %v188_v0, %v148_v53  ;;  %v211_v5 = vsub.f32 %v195_v1, %v150_v56  ;;  %v212_v6 = vsub.f32 %v202_v2, %v152_v61 }
  0x54   :  { %v213_v7 = vsub.f32 %v209_v3, %v154_v63 }
  0x55   :  { %v214_v8 = vsub.f32 0.0, %v210_v4  ;;  %v215_v9 = vsub.f32 0.0, %v211_v5  ;;  %v216_v10 = vsub.f32 0.0, %v212_v6 }
  0x56   :  { %v217_v11 = vsub.f32 0.0, %v213_v7 }
  0x57   :  { %v219_v12 = vsel %vm218_vm5, %v214_v8, 0.0  ;;  %v220_v13 = vsel %vm218_vm5, %v215_v9, 0.0  ;;  %v222_v14 = vsel %vm218_vm5, %v216_v10, 0.0 }
  0x58   :  { %v221_v15 = vadd.f32 %v220_v13, %v219_v12  ;;  %v224_v16 = vsel %vm218_vm5, %v217_v11, 0.0 }
  0x5a   :  { %v223_v17 = vadd.f32 %v222_v14, %v221_v15 }
  0x5c   :  { %v225_v18 = vadd.f32 %v224_v16, %v223_v17 }
  0x5e   :  { %226 = vadd.xlane.f32.xlu0 %v225_v18 }
  0xd1   :  { %v227_v19 = vpop.xlane.xlu0 %226 }
  0xd2   :  { %v228_v20 = vrot.slane %v227_v19, 4 }
  0xd4   :  { %v229_v21 = vadd.f32 %v228_v20, %v227_v19 }
  0xd6   :  { %v230_v22 = vrot.slane %v229_v21, 2 }
  0xd8   :  { %v231_v23 = vadd.f32 %v230_v22, %v229_v21 }
  0xda   :  { %v232_v24 = vrot.slane %v231_v23, 1 }
  0xdc   :  { %v233_v25 = vadd.f32 %v232_v24, %v231_v23 }
  0xde   :  { %256 = vpush %v233_v25 }
 0x10f   :  { %s257_s26 = spop %256 }
 0x110   :  { %v235_v26 = vstv %s257_s26 }
 0x111   :  { %237 = vst.msk [vmem:[#allocation7] sm:$0x1] %vm236_vm6, %v235_v26 }
 0x112   :  { %248 = dma.vmem_to_hbm [thread:$0]  %s244_s1, 16, %s246_s25, [#allocation4]  }
 0x113   :  { %353 = dma.done.wait [#allocation4], 16  }
 0x114   :  { %354 = vsyncadd [#allocation4], 4294967280 }
 0x115   :  { %253 = vsyncpa [#allocation3], 1 }
 0x116   :  { %254 = vsyncpa [#allocation6], 1 }
 0x117   :  { %255 = vsyncpa [#allocation4], 1 }

</bundles_post_ra>
